<compile_context>
chip_gen: v7x
topology: tpu7x:2x2x1
jax: 0.10.0
libtpu: 0.0.40
codegen_flags: <defaults>
</compile_context>

<pallas_src>
import jax
import jax.numpy as jnp
from jax.experimental import pallas as pl
from jax.experimental.pallas import tpu as pltpu

_LANE = 128
_TARGET_BLOCK_BYTES = 8 << 20   # ~8 MiB data blocks (double-buffered in+out ~= 33 MiB VMEM)


def _drop_path_kernel(scale_ref, x_ref, o_ref):
    # Pure elementwise scale with broadcast (scale is f32, x may be bf16/f16):
    #   flat path: scale (b_rows, 1)  *  x (b_rows, tile)
    #   slab path: scale (B, 1, 1)    *  x (B, rows, 128)
    o_ref[...] = (x_ref[...] * scale_ref[...]).astype(o_ref.dtype)


def _pack_multiple(dtype) -> int:
    """Sublane-pack multiple for the dtype: 8 (f32), 16 (bf16/f16), 32 (int8/fp8)."""
    itemsize = jnp.dtype(dtype).itemsize
    return 8 * max(1, 4 // itemsize)


def _vmem_clamp_bytes() -> int:
    """Generation-aware scoped-VMEM ceiling (leave headroom for compiler scratch)."""
    cap = None
    try:
        info = pltpu.get_tpu_info()
        cap = getattr(info, "vmem_capacity_bytes", None)
    except Exception:
        cap = None
    if not cap:
        cap = 64 << 20            # assume the smallest (v7x) if we cannot query
    # v7x (64 MiB physical) -> 48 MiB ceiling; v5e/v6e (128 MiB) -> 96 MiB ceiling.
    return int(min(max(int(cap) - (16 << 20), 48 << 20), 96 << 20))


def drop_path(x, drop_prob: float = 0.0, training: bool = False, *, key=None):
    """JAX/Pallas equivalent of the PyTorch drop_path function."""
    if drop_prob == 0.0 or not training:
        return x
    if key is None:
        raise ValueError(
            "drop_path: a PRNG `key` is required when training with drop_prob > 0.")

    keep_prob = 1.0 - float(drop_prob)
    B = x.shape[0]
    N = 1
    for d in x.shape[1:]:
        N *= d

    # Per-sample keep mask, computed in float32 (floor(keep_prob + u) in low
    # precision biases the keep rate), with 1/keep_prob folded in so the kernel
    # body is a single broadcasted multiply.
    # TODO(synk): optionally generate the mask in-kernel (pltpu.prng_seed /
    # prng_random_bits) to drop one tiny XLA dispatch for small activations;
    # it changes the random stream, so it stays off by default.
    u = jax.random.uniform(key, (B,), dtype=jnp.float32)
    scale = jnp.floor(keep_prob + u) / keep_prob      # {0, 1/keep_prob}, f32

    dtype_bytes = jnp.dtype(x.dtype).itemsize
    pack = _pack_multiple(x.dtype)
    vmem_cap = _vmem_clamp_bytes()

    if B < 8 and N % _LANE == 0:
        # ---- Small-batch slab path: (B, R, 128).  Keeping the tiny batch on
        # the untiled leading dim avoids padding it to 8 sublanes. ----
        R = N // _LANE
        per_row_bytes = B * _LANE * dtype_bytes
        rows = min(R, max(pack,
                          (_TARGET_BLOCK_BYTES // per_row_bytes) // pack * pack))
        # v7x megacore: >=4 grid steps (>=2 per TensorCore) when data is large.
        if pl.cdiv(R, rows) < 4 and B * R * _LANE * dtype_bytes >= (4 << 20):
            rows = max(pack, pl.cdiv(pl.cdiv(R, 4), pack) * pack)

        grid = (pl.cdiv(R, rows),)
        x3 = x.reshape(B, R, _LANE)
        scale3 = scale.reshape(B, 1, 1)

        rows_pad = pl.cdiv(rows, 8) * 8
        blk_bytes = B * rows_pad * _LANE * dtype_bytes
        scale_blk = B * 8 * _LANE * 4                 # (B,1,1) f32 pads to (B,8,128)
        vmem_limit = int(min(max(2 * (2 * blk_bytes + scale_blk) + (2 << 20),
                                 16 << 20), vmem_cap))

        out = pl.pallas_call(
            _drop_path_kernel,
            out_shape=jax.ShapeDtypeStruct((B, R, _LANE), x.dtype),
            grid=grid,
            in_specs=[
                pl.BlockSpec((B, 1, 1), lambda r: (0, 0, 0)),
                pl.BlockSpec((B, rows, _LANE), lambda r: (0, r, 0)),
            ],
            out_specs=pl.BlockSpec((B, rows, _LANE), lambda r: (0, r, 0)),
            compiler_params=pltpu.CompilerParams(
                dimension_semantics=("parallel",),
                vmem_limit_bytes=vmem_limit),
        )(scale3, x3)
        return out.reshape(x.shape)

    # ---- Main path: lane-dense flat (B, N) slab, batch AND feature tiled. ----
    x2 = x.reshape(B, N)
    scale2 = scale.reshape(B, 1)

    n_col = pl.cdiv(N, _LANE) * _LANE                 # lane-padded feature width
    sample_bytes = n_col * dtype_bytes

    if B <= pack:
        b_rows = B
    else:
        cand = max(pack, (_TARGET_BLOCK_BYTES // sample_bytes) // pack * pack)
        b_rows = B if cand >= B else cand             # full batch, or a pack multiple

    sub = pl.cdiv(b_rows, 8) * 8                      # sublane-padded rows of a block
    tile = max(_LANE, (_TARGET_BLOCK_BYTES // (sub * dtype_bytes)) // _LANE * _LANE)
    tile = min(tile, n_col)

    # v7x megacore: target >=4 grid steps (>=2 per TensorCore) when there is
    # enough data.  Prefer splitting the batch axis, then the feature axis;
    # keep blocks >= ~2 MiB so per-step overhead stays small.
    while (pl.cdiv(B, b_rows) * pl.cdiv(N, tile) < 4
           and b_rows > pack
           and sub * tile * dtype_bytes >= (2 << 20)):
        nb = max(pack, ((b_rows // 2) // pack) * pack)
        if nb == b_rows:
            break
        b_rows = nb
        sub = pl.cdiv(b_rows, 8) * 8
    while (pl.cdiv(B, b_rows) * pl.cdiv(N, tile) < 4
           and tile > _LANE
           and sub * tile * dtype_bytes >= (2 << 20)):
        nt = max(_LANE, ((tile // 2) // _LANE) * _LANE)
        if nt == tile:
            break
        tile = nt

    grid = (pl.cdiv(B, b_rows), pl.cdiv(N, tile))

    blk_bytes = sub * tile * dtype_bytes
    scale_blk = sub * _LANE * 4                       # (b_rows,1) f32 pads to (sub,128)
    vmem_limit = int(min(max(2 * (2 * blk_bytes + scale_blk) + (2 << 20),
                             16 << 20), vmem_cap))

    out = pl.pallas_call(
        _drop_path_kernel,
        out_shape=jax.ShapeDtypeStruct((B, N), x.dtype),
        grid=grid,
        in_specs=[
            pl.BlockSpec((b_rows, 1), lambda i, j: (i, 0)),
            pl.BlockSpec((b_rows, tile), lambda i, j: (i, j)),
        ],
        out_specs=pl.BlockSpec((b_rows, tile), lambda i, j: (i, j)),
        compiler_params=pltpu.CompilerParams(
            dimension_semantics=("parallel", "parallel"),
            vmem_limit_bytes=vmem_limit),
    )(scale2, x2)
    return out.reshape(x.shape)


class DropPath:
    """Drop paths (Stochastic Depth) per sample; Pallas-backed forward."""

    def __init__(self, drop_prob=None):
        self.drop_prob = drop_prob
        self.training = True

    def __call__(self, x, *, key=None):
        return drop_path(x, self.drop_prob, self.training, key=key)


if __name__ == "__main__":
    key = jax.random.PRNGKey(0)
    k_x, k_mask, k_x2, k_x3 = jax.random.split(key, 4)

    drop_prob = 0.25
    keep_prob = 1.0 - drop_prob

    def reference(x, mask_key):
        u = jax.random.uniform(mask_key, (x.shape[0],), dtype=jnp.float32)
        mask = jnp.floor(keep_prob + u).reshape((-1,) + (1,) * (x.ndim - 1))
        return x / keep_prob * mask

    # Small batch, lane-aligned features -> (B, R, 128) slab path.
    x = jax.random.normal(k_x, (2, 4, 16, 16), dtype=jnp.float32)
    module = DropPath(drop_prob=drop_prob)
    module.training = True
    y = jax.block_until_ready(module(x, key=k_mask))
    assert jnp.allclose(y, reference(x, k_mask), rtol=1e-6, atol=1e-6), "slab path mismatch"

    # Batch >= 8, lane-aligned -> flat (B, N) main path (batch + feature tiled).
    x_big = jax.random.normal(k_x3, (8, 4, 16, 16), dtype=jnp.float32)
    y_big = jax.block_until_ready(drop_path(x_big, drop_prob, True, key=k_mask))
    assert jnp.allclose(y_big, reference(x_big, k_mask), rtol=1e-6, atol=1e-6), "flat path mismatch"

    # Non-lane-aligned feature count -> flat path with ragged (masked) lane block.
    x_odd = jax.random.normal(k_x2, (2, 3, 7, 9), dtype=jnp.float32)
    y_odd = jax.block_until_ready(drop_path(x_odd, drop_prob, True, key=k_mask))
    assert jnp.allclose(y_odd, reference(x_odd, k_mask), rtol=1e-6, atol=1e-6), "ragged path mismatch"

    # Eval / drop_prob == 0 path is identity (no kernel), same as PyTorch.
    module.training = False
    y_eval = jax.block_until_ready(module(x, key=k_mask))
    assert jnp.array_equal(y_eval, x)

    print("KERNEL_OK")
</pallas_src>

<mosaic_0001>
module attributes {stable_mosaic.version = 11 : i64} {
  func.func @_drop_path_kernel(%arg0: i32, %arg1: memref<2x1x1xf32, #tpu.memory_space<vmem>>, %arg2: memref<2x8x128xf32, #tpu.memory_space<vmem>>, %arg3: memref<2x8x128xf32, #tpu.memory_space<vmem>>) attributes {dimension_semantics = [#tpu.dimension_semantics<parallel>], iteration_bounds = array<i64: 1>, scalar_prefetch = 0 : i64, scratch_operands = 0 : i64, tpu.core_type = #tpu.core_type<tc>, window_params = [{pipeline_mode = #tpu.pipeline_mode<synchronous>, transform_indices = @transform_0, window_bounds = array<i64: 2, 1, 1>}, {transform_indices = @transform_1, window_bounds = array<i64: 2, 8, 128>}, {transform_indices = @transform_2, window_bounds = array<i64: 2, 8, 128>}]} {
    %c0 = arith.constant 0 : index
    %c0_0 = arith.constant 0 : index
    %c0_1 = arith.constant 0 : index
    %0 = vector.load %arg2[%c0, %c0_0, %c0_1] : memref<2x8x128xf32, #tpu.memory_space<vmem>>, vector<2x8x128xf32>
    %c0_2 = arith.constant 0 : index
    %c0_3 = arith.constant 0 : index
    %c0_4 = arith.constant 0 : index
    %1 = vector.load %arg1[%c0_2, %c0_3, %c0_4] : memref<2x1x1xf32, #tpu.memory_space<vmem>>, vector<2x1x1xf32>
    %2 = vector.broadcast %1 : vector<2x1x1xf32> to vector<2x8x128xf32>
    %3 = arith.mulf %0, %2 : vector<2x8x128xf32>
    %c0_5 = arith.constant 0 : index
    %c0_6 = arith.constant 0 : index
    %c0_7 = arith.constant 0 : index
    %4 = vector.load %arg3[%c0_5, %c0_6, %c0_7] : memref<2x8x128xf32, #tpu.memory_space<vmem>>, vector<2x8x128xf32>
    tpu.vector_store %arg3[%c0_5, %c0_6, %c0_7], %3 {strides = array<i32>} : memref<2x8x128xf32, #tpu.memory_space<vmem>>, vector<2x8x128xf32>,
    return
  }
  func.func @transform_0(%arg0: i32) -> (i32, i32, i32) {
    %c0_i32 = arith.constant 0 : i32
    %c0_i32_0 = arith.constant 0 : i32
    %c0_i32_1 = arith.constant 0 : i32
    %c0_i32_2 = arith.constant 0 : i32
    return %c0_i32, %c0_i32_0, %c0_i32_1 : i32, i32, i32
  }
  func.func @transform_1(%arg0: i32) -> (i32, i32, i32) {
    %c0_i32 = arith.constant 0 : i32
    %c0_i32_0 = arith.constant 0 : i32
    %c0_i32_1 = arith.constant 0 : i32
    return %c0_i32, %arg0, %c0_i32_0 : i32, i32, i32
  }
  func.func @transform_2(%arg0: i32) -> (i32, i32, i32) {
    %c0_i32 = arith.constant 0 : i32
    %c0_i32_0 = arith.constant 0 : i32
    %c0_i32_1 = arith.constant 0 : i32
    return %c0_i32, %arg0, %c0_i32_0 : i32, i32, i32
  }
}

</mosaic_0001>

<bundles_post_ra>
// kernel: tpu_custom_call.1
= control target key start
LH: loop header
LB: loop body
LE: loop exit
PB: predicated region body
PF: predicated region fallthrough
CT: control target
= control target key end

     0   :  { %7 = vsyncpa [#allocation3], 0  ;;  %s181_s0 = inlined_call_operand.vmem [shape: f32[2,1,1], index: 0, kind: input, shape index: {}]   ;;  %s182_s1 = inlined_call_operand.hbm [shape: f32[2,8,128], index: 1, kind: input, shape index: {}]   ;;  %s183_s2 = inlined_call_operand.hbm [shape: f32[2,8,128], index: 2, kind: output, shape index: {}]  }
   0x1   :  { %8 = vsyncpa [#allocation4], 0  ;;  %s125_s9 = smov [#allocation2]   ;;  %s77_s13 = scalar_lea.hbm %s182_s1, 256 }
   0x2   :  { %s16_s10 = sshll.u32 %s125_s9, 4  ;;  %p78_p0 = scmp.ne.s32.totalorder %s182_s1, %s77_s13  ;;  %s17_s10 = int_to_ptr.vmem [resolvable:$true] %s16_s10 }
   0x3   :  { %p81_p1 = scmp.lt.u32.totalorder %s77_s13, %s182_s1 }
   0x5   :  { %p83_p2 = pnand %p81_p1, %p78_p0 }
   0x7   :  { %86 = shalt.err (!%p83_p2)
}
   0x8   :  { %s87_s18 = scalar_lea.vmem %s17_s10, 256  ;;  %p92_p4 = scmp.lt.s32.totalorder %s17_s10, %s17_s10 }
   0x9   :  { %p88_p3 = scmp.ne.s32.totalorder %s17_s10, %s87_s18  ;;  %p93_p5 = scmp.lt.s32.totalorder %s87_s18, %s87_s18 }
   0xb   :  { %p94_p6 = por %p93_p5, %p92_p4 }
   0xd   :  { %p95_p7 = pnand %p94_p6, %p88_p3 }
   0xf   :  { %98 = shalt.err (!%p95_p7)
}
  0x10   :  { %s126_s19 = smov 128   ;;  %s127_s20 = smov 8  }
  0x11   :  { %22 = dma.hbm_to_vmem [thread:$0]  %s182_s1, 256, %s17_s10, [#allocation3], %s126_s19, %s126_s19, %s127_s20  }
  0x12   :  { %121 = dma.done.wait [#allocation3], 256  }
  0x13   :  { %122 = vsyncadd [#allocation3], 4294967040  ;;  %v128_v0 = vmov 0   ;;  %v69_v1 = vld [vmem:[%s181_s0] ss:$0 sm:$0xff]  ;;  %v27_v6 = vld [vmem:[#allocation2 + $0x8] sm:$0xff] }
  0x14   :  { %76 = vset.pattern.permute.xlu0 %v128_v0  ;;  %v70_v2 = vld [vmem:[%s181_s0 + $0x1] ss:$0 sm:$0xff]  ;;  %s129_s27 = smov [#allocation5]  }
  0x15   :  { %41 = vperm.xlu0 %76, %v69_v1   ;;  %v26_v3 = vld [vmem:[#allocation2] sm:$0xff]  ;;  %s57_s1 = sshll.u32 %s129_s27, 4  ;;  %s58_s1 = int_to_ptr.vmem [resolvable:$true] %s57_s1 }
  0x16   :  { %s99_s28 = scalar_lea.vmem %s58_s1, 256  ;;  %p104_p9 = scmp.lt.s32.totalorder %s58_s1, %s58_s1 }
  0x17   :  { %p100_p8 = scmp.ne.s32.totalorder %s58_s1, %s99_s28  ;;  %p105_p10 = scmp.lt.s32.totalorder %s99_s28, %s99_s28 }
  0x19   :  { %45 = vperm.xlu0 %76, %v70_v2   ;;  %p106_p11 = por %p105_p10, %p104_p9 }
  0x1b   :  { %p107_p12 = pnand %p106_p11, %p100_p8 }
  0x94   :  { %v42_v4 = vpop.permute.xlu0 %41 }
  0x95   :  { %v48_v5 = vmul.f32 %v42_v4, %v26_v3 }
  0x97   :  { %50 = vst [vmem:[#allocation5] sm:$0xff] %v48_v5 }
  0x98   :  { %v46_v7 = vpop.permute.xlu0 %45 }
  0x99   :  { %v49_v8 = vmul.f32 %v46_v7, %v27_v6 }
  0x9b   :  { %51 = vst [vmem:[#allocation5 + $0x8] sm:$0xff] %v49_v8 }
  0x9c   :  { %110 = shalt.err (!%p107_p12)
}
  0x9d   :  { %s111_s30 = scalar_lea.hbm %s183_s2, 256 }
  0x9e   :  { %p112_p13 = scmp.ne.s32.totalorder %s183_s2, %s111_s30  ;;  %p115_p0 = scmp.lt.u32.totalorder %s111_s30, %s183_s2 }
  0xa0   :  { %p117_p1 = pnand %p115_p0, %p112_p13 }
  0xa2   :  { %120 = shalt.err (!%p117_p1)
}
  0xa3   :  { %63 = dma.vmem_to_hbm [thread:$0]  %s58_s1, 256, %s183_s2, [#allocation4], %s126_s19, %s126_s19, %s127_s20  }
  0xa4   :  { %123 = dma.done.wait [#allocation4], 256  }
  0xa5   :  { %124 = vsyncadd [#allocation4], 4294967040 }
  0xa6   :  { %67 = vsyncpa [#allocation3], 1 }
  0xa7   :  { %68 = vsyncpa [#allocation4], 1 }

</bundles_post_ra>
